<compile_context>
chip_gen: v5e
topology: v5e:2x2
jax: 0.10.0
libtpu: 0.0.40
codegen_flags: <defaults>
</compile_context>

<pallas_src>
import functools

import jax
import jax.numpy as jnp
from jax import lax
from jax.experimental import pallas as pl
from jax.experimental.pallas import tpu as pltpu


def _round_up(a: int, b: int) -> int:
    return (a + b - 1) // b * b


def _choose_tm(Mb: int, batch: int, K: int, E: int, out_itemsize: int) -> int:
    """Largest M-tile whose double-buffered working set stays under ~20 MiB."""
    budget = 20 * 1024 * 1024
    ep = _round_up(E, 128)          # lane padding of the (TM, E) output block
    kp = _round_up(K, 16)           # sublane padding of the bf16 (K, TM) block
    per_col = 2 * (kp * 2) + 2 * (ep * out_itemsize)
    cap = min(8192, max(128, (budget // per_col) // 128 * 128))
    if batch == 1 and Mb >= 256:
        # Keep at least two M tiles so the "parallel" grid can span both
        # TensorCores on v7x.
        cap = min(cap, max(128, _round_up(-(-Mb // 2), 128)))
    if Mb <= cap:
        return _round_up(Mb, 16)    # single tile; 16 = bf16 sublane packing
    tm = cap
    if Mb % 128 == 0:
        # Prefer a TM that divides M exactly: no M padding, no un-pad slice.
        while tm >= 128 and Mb % tm:
            tm -= 128
        if tm < 128:
            tm = cap
    return tm


# ---------------------------------------------------------------------------
# Pallas kernel: (K, TM) x (K, E) MXU matmul tile + bias, stored channel-minor
# ---------------------------------------------------------------------------
def _proj_kernel(lhsT_ref, w_ref, b_ref, o_ref):
    # lhsT_ref: (K, TM)  bf16 K-major im2col tile (streamed over M)
    # w_ref:    (K, E)   bf16 flattened conv weight (VMEM-resident)
    # b_ref:    (1, E)   f32 bias (VMEM-resident)
    # o_ref:    (TM, E)  output tile, channel-minor (NHWC order)
    acc = lax.dot_general(
        lhsT_ref[...], w_ref[...],
        dimension_numbers=(((0,), (0,)), ((), ())),   # contract K (dim 0 of both)
        preferred_element_type=jnp.float32)
    o_ref[...] = (acc + b_ref[...]).astype(o_ref.dtype)


def _proj_matmul(patchesT, w_kn, bias_2d, tm, out_dtype):
    B, K, Mp = patchesT.shape
    _, E = w_kn.shape
    out_isz = jnp.dtype(out_dtype).itemsize

    cost = pl.CostEstimate(
        flops=2 * B * Mp * K * E,
        transcendentals=0,
        bytes_accessed=(B * Mp * K * patchesT.dtype.itemsize
                        + K * E * w_kn.dtype.itemsize
                        + E * 4
                        + B * Mp * E * out_isz),
    )

    return pl.pallas_call(
        _proj_kernel,
        out_shape=jax.ShapeDtypeStruct((B, Mp, E), out_dtype),
        grid=(B, Mp // tm),
        in_specs=[
            pl.BlockSpec((None, K, tm), lambda b, i: (b, 0, i)),   # streamed over M
            pl.BlockSpec((K, E), lambda b, i: (0, 0)),             # resident weight
            pl.BlockSpec((1, E), lambda b, i: (0, 0)),             # resident bias
        ],
        out_specs=pl.BlockSpec((None, tm, E), lambda b, i: (b, i, 0)),
        compiler_params=pltpu.CompilerParams(
            dimension_semantics=("parallel", "parallel"),
            vmem_limit_bytes=32 * 1024 * 1024,
        ),
        cost_estimate=cost,
    )(patchesT, w_kn, bias_2d)


# ---------------------------------------------------------------------------
# PatchEmbed forward (glue in plain JAX, GEMM in Pallas)
# ---------------------------------------------------------------------------
@functools.partial(
    jax.jit, static_argnames=("kernel_size", "stride", "padding", "out_dtype"))
def patch_embed_forward(x, weight, bias,
                        kernel_size=(7, 7), stride=(4, 4), padding=(3, 3),
                        out_dtype=jnp.bfloat16):
    """x: (B, C, H, W) NCHW.  weight: (embed_dim, C, kh, kw).  bias: (embed_dim,).
    Returns NHWC (B, Ho, Wo, embed_dim) == Conv2d(...)(x).permute(0, 2, 3, 1).

    Contract: inputs feed the MXU as bf16 (f32 accumulation) and the result is
    stored as `out_dtype` (bf16 by default) to halve the output HBM stream."""
    B, C, H, W = x.shape
    E, _, kh, kw = weight.shape
    sh, sw = stride
    ph, pw = padding

    Ho = (H + 2 * ph - kh) // sh + 1
    Wo = (W + 2 * pw - kw) // sw + 1
    Mb = Ho * Wo
    K = C * kh * kw

    xb = x.astype(jnp.bfloat16)
    wb = weight.astype(jnp.bfloat16)

    # K-major im2col: patchesT[b, (c,ki,kj), (ho,wo)] = x_pad[b,c,ho*sh+ki,wo*sw+kj]
    # (no transpose pass; minor dim Ho*Wo stays dense in HBM).
    xp = jnp.pad(xb, ((0, 0), (0, 0), (ph, ph), (pw, pw)))
    cols = [xp[:, :, ki:ki + sh * Ho:sh, kj:kj + sw * Wo:sw]
            for ki in range(kh) for kj in range(kw)]           # each (B, C, Ho, Wo)
    patchesT = jnp.stack(cols, axis=2).reshape(B, K, Mb)        # (B, K, M)

    # Weight flattened to (K, E) with the same (c, ki, kj) K order; bias in f32.
    w_kn = wb.reshape(E, K).T
    bias_2d = bias.astype(jnp.float32).reshape(1, E)

    # M tiling (prefers TM | M so no padding / un-pad slice is needed).
    tm = _choose_tm(Mb, B, K, E, jnp.dtype(out_dtype).itemsize)
    Mp = _round_up(Mb, tm)
    if Mp != Mb:
        patchesT = jnp.pad(patchesT, ((0, 0), (0, 0), (0, Mp - Mb)))

    out = _proj_matmul(patchesT, w_kn, bias_2d, tm, out_dtype)  # (B, Mp, E)
    if Mp != Mb:
        out = out[:, :Mb, :]
    return out.reshape(B, Ho, Wo, E)                            # NHWC


if __name__ == "__main__":
    # Small deterministic setup consistent with the module defaults
    # (kernel 7, stride 4, pad 3, in_chans=3); embed_dim shrunk to 32.
    B, C, H, W = 2, 3, 16, 16
    E = 32
    k, s, p = (7, 7), (4, 4), (3, 3)

    key = jax.random.PRNGKey(0)
    kx, kw_, kb = jax.random.split(key, 3)
    x = jax.random.normal(kx, (B, C, H, W), dtype=jnp.float32)
    weight = jax.random.normal(kw_, (E, C, k[0], k[1]), dtype=jnp.float32) * 0.02
    bias = jax.random.normal(kb, (E,), dtype=jnp.float32) * 0.01

    y = patch_embed_forward(x, weight, bias, kernel_size=k, stride=s, padding=p)
    y = jax.block_until_ready(y)

    # Reference: f32 conv on the same bf16-rounded inputs (the kernel feeds
    # bf16 to the MXU with f32 accumulation and stores bf16), NHWC output.
    xb32 = x.astype(jnp.bfloat16).astype(jnp.float32)
    wb32 = weight.astype(jnp.bfloat16).astype(jnp.float32)
    ref = lax.conv_general_dilated(
        xb32, wb32, window_strides=s,
        padding=[(p[0], p[0]), (p[1], p[1])],
        dimension_numbers=("NCHW", "OIHW", "NCHW"),
        precision=lax.Precision.HIGHEST)
    ref = ref + bias[None, :, None, None]
    ref = jnp.transpose(ref, (0, 2, 3, 1))

    assert y.shape == (B, 4, 4, E), y.shape
    y32 = y.astype(jnp.float32)
    err = float(jnp.abs(y32 - ref).max())
    assert jnp.allclose(y32, ref, atol=2e-2, rtol=2e-2), err
    print("KERNEL_OK")
</pallas_src>

<mosaic_0001>
module attributes {stable_mosaic.version = 11 : i64} {
  func.func @_proj_kernel(%arg0: i32, %arg1: i32, %arg2: memref<1x147x16xbf16, #tpu.memory_space<vmem>>, %arg3: memref<147x32xbf16, #tpu.memory_space<vmem>>, %arg4: memref<1x32xf32, #tpu.memory_space<vmem>>, %arg5: memref<1x16x32xbf16, #tpu.memory_space<vmem>>) attributes {dimension_semantics = [#tpu.dimension_semantics<parallel>, #tpu.dimension_semantics<parallel>], iteration_bounds = array<i64: 2, 1>, scalar_prefetch = 0 : i64, scratch_operands = 0 : i64, tpu.core_type = #tpu.core_type<tc>, window_params = [{transform_indices = @transform_0, window_bounds = array<i64: 1, 147, 16>}, {pipeline_mode = #tpu.pipeline_mode<synchronous>, transform_indices = @transform_1, window_bounds = array<i64: 147, 32>}, {pipeline_mode = #tpu.pipeline_mode<synchronous>, transform_indices = @transform_2, window_bounds = array<i64: 1, 32>}, {transform_indices = @transform_3, window_bounds = array<i64: 1, 16, 32>}]} {
    %c0 = arith.constant 0 : index
    %c0_0 = arith.constant 0 : index
    %c0_1 = arith.constant 0 : index
    %0 = vector.load %arg2[%c0, %c0_0, %c0_1] : memref<1x147x16xbf16, #tpu.memory_space<vmem>>, vector<1x147x16xbf16>
    %1 = vector.shape_cast %0 : vector<1x147x16xbf16> to vector<147x16xbf16>
    %c0_2 = arith.constant 0 : index
    %c0_3 = arith.constant 0 : index
    %2 = vector.load %arg3[%c0_2, %c0_3] : memref<147x32xbf16, #tpu.memory_space<vmem>>, vector<147x32xbf16>
    %cst = arith.constant dense<0.000000e+00> : vector<16x32xf32>
    %3 = tpu.matmul %1, %2, %cst {dimension_numbers = #tpu.dot_dimension_numbers<[0], [0], [1], [1], [0, 1, 1, 1], [], []>} : vector<147x16xbf16>, vector<147x32xbf16>, vector<16x32xf32> -> vector<16x32xf32>
    %c0_4 = arith.constant 0 : index
    %c0_5 = arith.constant 0 : index
    %4 = vector.load %arg4[%c0_4, %c0_5] : memref<1x32xf32, #tpu.memory_space<vmem>>, vector<1x32xf32>
    %5 = vector.broadcast %4 : vector<1x32xf32> to vector<16x32xf32>
    %6 = arith.addf %3, %5 : vector<16x32xf32>
    %7 = arith.truncf %6 : vector<16x32xf32> to vector<16x32xbf16>
    %c0_6 = arith.constant 0 : index
    %c0_7 = arith.constant 0 : index
    %c0_8 = arith.constant 0 : index
    %8 = vector.load %arg5[%c0_6, %c0_7, %c0_8] : memref<1x16x32xbf16, #tpu.memory_space<vmem>>, vector<1x16x32xbf16>
    %9 = vector.shape_cast %8 : vector<1x16x32xbf16> to vector<16x32xbf16>
    %10 = vector.shape_cast %7 : vector<16x32xbf16> to vector<1x16x32xbf16>
    tpu.vector_store %arg5[%c0_6, %c0_7, %c0_8], %10 {strides = array<i32>} : memref<1x16x32xbf16, #tpu.memory_space<vmem>>, vector<1x16x32xbf16>,
    return
  }
  func.func @transform_0(%arg0: i32, %arg1: i32) -> (i32, i32, i32) {
    %c0_i32 = arith.constant 0 : i32
    %c0_i32_0 = arith.constant 0 : i32
    return %arg0, %c0_i32, %arg1 : i32, i32, i32
  }
  func.func @transform_1(%arg0: i32, %arg1: i32) -> (i32, i32) {
    %c0_i32 = arith.constant 0 : i32
    %c0_i32_0 = arith.constant 0 : i32
    %c0_i32_1 = arith.constant 0 : i32
    return %c0_i32, %c0_i32_0 : i32, i32
  }
  func.func @transform_2(%arg0: i32, %arg1: i32) -> (i32, i32) {
    %c0_i32 = arith.constant 0 : i32
    %c0_i32_0 = arith.constant 0 : i32
    %c0_i32_1 = arith.constant 0 : i32
    return %c0_i32, %c0_i32_0 : i32, i32
  }
  func.func @transform_3(%arg0: i32, %arg1: i32) -> (i32, i32, i32) {
    %c0_i32 = arith.constant 0 : i32
    %c0_i32_0 = arith.constant 0 : i32
    return %arg0, %arg1, %c0_i32 : i32, i32, i32
  }
}

</mosaic_0001>

<bundles_post_ra>
// kernel: patch_embed_forward.1
= control target key start
LH: loop header
LB: loop body
LE: loop exit
PB: predicated region body
PF: predicated region fallthrough
CT: control target
= control target key end

     0   :  { %8 = vsyncpa [#allocation3], 0  ;;  %s939_s0 = inlined_call_operand.vmem [shape: bf16[2,147,16], index: 0, kind: input, shape index: {}]   ;;  %s940_s1 = inlined_call_operand.vmem [shape: bf16[147,32], index: 1, kind: input, shape index: {}]   ;;  %s941_s2 = inlined_call_operand.vmem [shape: f32[1,32], index: 2, kind: input, shape index: {}]   ;;  %s942_s3 = inlined_call_operand.hbm [shape: bf16[2,16,32], index: 3, kind: output, shape index: {}]  }
   0x1   :  { %10 = vsyncpa [#allocation3 + $0x1], 0  ;;  %s797_s12 = smov 0   ;;  %s799_s13 = smov 0  }
   0x2   :  { %s801_s14 = smov 0   ;;  %s803_s15 = smov 0  }
   0x3   :  { %s805_s16 = smov 0   ;;  %s807_s17 = smov 0  }
   0x4 LB: > { %s526_s18 = sadd.s32 4294967295, %s772_s17   ;;  %s527_s19 = sadd.s32 4294967294, %s772_s17   ;;  %s772_s17 = sphi %s807_s17, %s16_s17   ;;  %s768_s16 = sphi %s805_s16, %s949_s16   ;;  %s764_s15 = sphi %s803_s15, %s948_s15   ;;  %s760_s14 = sphi %s801_s14, %s947_s14   ;;  %s756_s13 = sphi %s799_s13, %s946_s13   ;;  %s752_s12 = sphi %s797_s12, %s945_s12  }
   0x5   : > { %s28_s20 = sadd.s32 1, %s768_s16  ;;  %s107_s21 = sadd.s32 1, %s760_s14 }
   0x6   : > { %p30_p0 = scmp.ge.s32.totalorder %s28_s20, 2  ;;  %p117_p1 = scmp.ne.s32.totalorder %s760_s14, %s756_s13 }
   0x7   : > { %p118_p2 = scmp.eq.s32.totalorder %s526_s18, 1  ;;  %p123_p3 = scmp.ne.s32.totalorder %s756_s13, %s752_s12 }
   0x8   : > { %s951_s20 = smov (%p30_p0, %s28_s20), 0  ;;  %p124_p5 = scmp.eq.s32.totalorder %s527_s19, 1 }
   0x9   : > { %p837_p4 = por %p118_p2, %p117_p1  ;;  %s102_s23 = ssub.s32 %s768_s16, %s951_s20 }
   0xa   : > { %p530_p6 = scmp.ge.s32.totalorder %s772_s17, 1  ;;  %p105_p7 = scmp.eq.s32.totalorder %s102_s23, 0 }
   0xb   : > { %p844_p8 = por %p124_p5, %p123_p3  ;;  %p159_p9 = scmp.lt.s32.totalorder %s772_s17, 3 }
   0xc   : > { %s850_s25 = scalar_select %p105_p7, %s760_s14, %s107_s21  }
   0xd   : > { %p160_p10 = pnand %p530_p6, %p159_p9 }
   0xe   : > { %p186_p11 = scmp.lt.s32.totalorder (!%p160_p10), %s764_s15, 1  ;;  %s183_s10 = sand.u32 (!%p160_p10), 1, %s756_s13  }
   0xf   : > { %163 = sbr.rel (%p160_p10) target bundleno = 344 (0x158), region = 32  ;;  %s531_s11 = sshll.u32 (!%p160_p10), %s183_s10, 3 }
  0x10   : > { %s629_s18 = sshll.u32 (!%p160_p10), %s764_s15, 3  ;;  %s185_s23 = scalar_lea.vmem (!%p160_p10), [#allocation2], %s531_s11 }
  0x11   : > { %s443_s21 = scalar_lea.hbm (!%p160_p10), %s942_s3, %s629_s18  ;;  %s714_s6 = scalar_lea.hbm (!%p160_p10), %s942_s3, 16 }
  0x14   : > { %s187_s26 = scalar_select %p186_p11, %s764_s15, 1  ;;  %v627_v10 = vld [vmem:[%s940_s1 + $0x38] sm:$0xff]  ;;  %vm389_vm0 = vcmask 1040384   ;;  %vm390_vm1 = vcmask 1041408   ;;  %v626_v11 = vld [vmem:[%s940_s1 + $0x30] sm:$0xff]  ;;  %v774_v13 = vmov 65535  }
  0x15   : > { %396 = vmatpush.bf16.msra.mxu0 %v627_v10  ;;  %v233_v12 = vld [vmem:[%s940_s1 + $0x48] sm:$0x3]  ;;  %v391_v14 = vsel %vm389_vm0, 4294967295, %v774_v13  ;;  %v628_v20 = vld [vmem:[%s940_s1 + $0x40] sm:$0xff]  ;;  %v623_v23 = vld [vmem:[%s940_s1 + $0x18] sm:$0xff]  ;;  %vm385_vm2 = vcmask 154624  }
  0x16   : > { %s633_s27 = smul.u32 76, %s187_s26  ;;  %v365_v15 = vunpack.c.l.b16 %v233_v12  ;;  %v392_v16 = vsel %vm390_vm1, %v391_v14, 0  ;;  %v625_v18 = vld [vmem:[%s940_s1 + $0x28] sm:$0xff]  ;;  %v624_v21 = vld [vmem:[%s940_s1 + $0x20] sm:$0xff]  ;;  %v622_v24 = vld [vmem:[%s940_s1 + $0x10] sm:$0xff]  ;;  %vm426_vm3 = vcmask 257024  }
  0x17   : > { %v621_v25 = vld [vmem:[%s940_s1 + $0x8] sm:$0xff]  ;;  %v620_v26 = vld [vmem:[%s940_s1] sm:$0xff]  ;;  %s444_s26 = sshll.u32 %s185_s23, 4  ;;  %s430_s15 = scalar_lea.sflag [#allocation3], %s183_s10  ;;  %s445_s26 = int_to_ptr.vmem [resolvable:$true] %s444_s26 }
  0x18   : > { %s857_s30 = scalar_lea.vmem %s939_s0, %s633_s27  ;;  %v375_v17 = vpack.c.b16 %v365_v15, %v365_v15  ;;  %v693_v30 = vld [vmem:[%s941_s2] ss:$0 sm:$0xff]  ;;  %s446_s27 = sshll.u32 %s443_s21, 4  ;;  %s447_s27 = int_to_ptr.hbm [resolvable:$true] %s446_s27 }
  0x19   : > { %v619_v0 = vld [vmem:[%s857_s30 + $0x40] sm:$0xff]  ;;  %v214_v2 = vld [vmem:[%s857_s30 + $0x48] sm:$0x3]  ;;  %v613_v6 = vld [vmem:[%s857_s30 + $0x10] sm:$0xff]  ;;  %397 = vmatpush.bf16.msra.mxu0 %v626_v11  ;;  %s708_s28 = sshra.s32 %s447_s27, 4  ;;  %s709_s28 = int_to_ptr.hbm [resolvable:$true] %s708_s28 }
  0x1a   : > { %v611_v1 = vld [vmem:[%s857_s30] sm:$0xff]  ;;  %312 = vxpose.xlu1.c.b16.start [1/2] (short) (narrow) %v619_v0, 16  ;;  %v275_v3 = vunpack.c.l.b16 %v214_v2  ;;  %v612_v5 = vld [vmem:[%s857_s30 + $0x8] sm:$0xff]  ;;  %v614_v7 = vld [vmem:[%s857_s30 + $0x18] sm:$0xff]  ;;  %v394_v19 = vand.u32 %v392_v16, %v375_v17  ;;  %s710_s29 = scalar_lea.hbm %s709_s28, 8  ;;  %p715_p1 = scmp.lt.s32.totalorder %s709_s28, %s942_s3 }
  0x1b   : > { %296 = vxpose.xlu0.c.b16.start [1/8] (narrow) %v611_v1, 16  ;;  %v615_v8 = vld [vmem:[%s857_s30 + $0x20] sm:$0xff]  ;;  %v616_v9 = vld [vmem:[%s857_s30 + $0x28] sm:$0xff]  ;;  %v617_v22 = vld [vmem:[%s857_s30 + $0x30] sm:$0xff]  ;;  %p711_p12 = scmp.ne.s32.totalorder %s709_s28, %s710_s29  ;;  %p716_p2 = scmp.lt.s32.totalorder %s714_s6, %s710_s29 }
  0x1c   : > { %v285_v4 = vpack.c.b16 %v275_v3, %v275_v3  ;;  %416 = vmatpush.bf16.msra.mxu1 %v394_v19  ;;  %v618_v27 = vld [vmem:[%s857_s30 + $0x38] sm:$0xff] }
  0x1d   : > { %398 = vmatpush.bf16.msra.mxu0 %v625_v18  ;;  %p712_p13 = pnand %p711_p12, %p837_p4  ;;  %p717_p3 = por %p716_p2, %p715_p1 }
  0x1f   : > { %p713_p0 = pneg %p712_p13 }
  0x20   : > { %417 = vmatpush.bf16.msra.mxu1 %v628_v20 }
  0x21   : > { %399 = vmatpush.bf16.msra.mxu0 %v624_v21  ;;  %p718_p5 = pnand %p717_p3, %p713_p0 }
  0x25   : > { %400 = vmatpush.bf16.msra.mxu0 %v623_v23 }
  0x29   : > { %401 = vmatpush.bf16.msra.mxu0 %v622_v24 }
  0x2a   : > { %313 = vxpose.xlu1.c.b16.end [2/2] (short) (narrow) %v285_v4, 16 }
  0x2b   : > { %297 = vxpose.xlu0.c.b16.cont [2/8] (narrow) %v612_v5, 16 }
  0x2d   : > { %402 = vmatpush.bf16.msra.mxu0 %v621_v25 }
  0x31   : > { %403 = vmatpush.bf16.msra.mxu0 %v620_v26 }
  0x3b   : > { %298 = vxpose.xlu0.c.b16.cont [3/8] (narrow) %v613_v6, 16 }
  0x4b   : > { %299 = vxpose.xlu0.c.b16.cont [4/8] (narrow) %v614_v7, 16 }
  0x5b   : > { %300 = vxpose.xlu0.c.b16.cont [5/8] (narrow) %v615_v8, 16 }
  0x6b   : > { %301 = vxpose.xlu0.c.b16.cont [6/8] (narrow) %v616_v9, 16 }
  0x7b   : > { %302 = vxpose.xlu0.c.b16.cont [7/8] (narrow) %v617_v22, 16 }
  0x8b   : > { %303 = vxpose.xlu0.c.b16.end [8/8] (narrow) %v618_v27, 16 }
  0xc6   : > { %v320_v28 = vpop.trf.xlu1 }
  0xc7   : > { %v304_v29 = vpop.trf.xlu0  ;;  %605 = vmatmul.msk.bf16.vlgmr.msra.gmra.mxu1 %vm385_vm2, %v320_v28 }
  0xc8   : > { %404 = vmatmul.bf16.vlgmr.msra.gmra.mxu0 %v304_v29 }
 0x144   : > { %v419_v32 = vpop.f32.mrf.mxu1 }
 0x145   : > { %v405_v31 = vpop.f32.mrf.mxu0 }
 0x146   : > { %v406_v33 = vadd.f32 %v693_v30, %v405_v31 }
 0x148   : > { %v420_v34 = vadd.f32 %v419_v32, %v406_v33 }
 0x14a   : > { %v424_v35 = vpack.c.bf16 %v420_v34, %v420_v34 }
 0x14c   : > { %427 = vst.msk [vmem:[%s185_s23] sm:$0xf] %vm426_vm3, %v424_v35  ;;  %v421_v38 = vpop.f32.mrf.mxu1 }
 0x14d   : > { %v407_v36 = vpop.f32.mrf.mxu0 }
 0x14e   : > { %v408_v37 = vadd.f32 %v693_v30, %v407_v36 }
 0x150   : > { %v422_v39 = vadd.f32 %v421_v38, %v408_v37 }
 0x152   : > { %v425_v40 = vpack.c.bf16 %v422_v39, %v422_v39 }
 0x154   : > { %428 = vst.msk [vmem:[%s185_s23 + $0x4] sm:$0xf] %vm426_vm3, %v425_v40 }
 0x155   : > { %721 = shalt.err (!%p718_p5)
}
 0x156   : > { %s775_s9 = smov 64   ;;  %s776_s10 = smov 4  }
 0x157   : > { %634 = dma.vmem_to_hbm [thread:$0]  (%p837_p4), %s445_s26, 128, %s447_s27, %s430_s15, %s775_s9, %s775_s9, %s776_s10  }
 0x158 PF: > { %p640_p6 = scmp.ge.s32.totalorder %s772_s17, 2  ;;  %s461_s11 = sand.u32 1, %s752_s12  }
 0x159   : > { %s462_s18 = scalar_lea.sflag [#allocation3], %s461_s11 }
 0x15a   : > { %p637_p7 = pnand %p640_p6, %p844_p8 }
 0x15c   : > { %p638_p9 = pneg %p637_p7 }
 0x15e   : > { %747 = dma.done.wait (%p638_p9), %s462_s18, 128  }
 0x15f   : > { %749 = vsyncadd (%p638_p9), %s462_s18, 4294967168  ;;  %s16_s17 = sadd.s32 1, %s772_s17   ;;  %s945_s12 = smov %s756_s13 }
 0x160   : > { %p13_p10 = scmp.ge.s32.totalorder %s16_s17, 4   ;;  %s946_s13 = smov %s760_s14 }
 0x161   : > { %s947_s14 = smov %s850_s25  ;;  %s948_s15 = smov %s768_s16 }
 0x162   : > { %s949_s16 = smov %s951_s20  ;;  %15 = sbr.rel (!%p13_p10) target bundleno = 4 (0x4), region = 67 }
 0x167   :  { %468 = vsyncpa [#allocation3], 1 }
 0x168   :  { %470 = vsyncpa [#allocation3 + $0x1], 1 }

</bundles_post_ra>
